<compile_context>
chip_gen: v5e
topology: v5e:2x2
jax: 0.10.0
libtpu: 0.0.40
codegen_flags: <defaults>
</compile_context>

<pallas_src>
import jax
import jax.numpy as jnp
from jax.experimental import pallas as pl
from jax.experimental.pallas import tpu as pltpu


def _ce_rows_kernel(x_ref, y_ref, nll_ref):
    """Per-row negative log-likelihood for one (TM, C) tile of logits.

    x_ref:   (TM, C) logits (input dtype; cast to f32 here, not in the wrapper)
    y_ref:   (TM, 1) int32 class indices
    nll_ref: (TM, 1) f32 per-row NLL
    """
    x = x_ref[...].astype(jnp.float32)                               # (TM, C)
    labels = y_ref[...]                                              # (TM, 1) int32
    tm, c = x.shape

    # Numerically-stable log-sum-exp along the class axis
    # (max/sum reductions -> XLU slot, exp/log -> EUP slot).
    m = jnp.max(x, axis=-1, keepdims=True)                           # (TM, 1)
    z = x - m                                                        # (TM, C)
    lse = jnp.log(jnp.sum(jnp.exp(z), axis=-1, keepdims=True))       # (TM, 1)

    # Target logit via a one-hot mask (no dynamic gather on TPU). We do NOT
    # materialize the full log-softmax: nll = (m + lse) - x[target], which drops
    # one (TM, C) subtraction and one (TM, C) temporary vs. the logp formulation.
    col = jax.lax.broadcasted_iota(jnp.int32, (tm, c), 1)            # (TM, C)
    target = jnp.sum(jnp.where(col == labels, x, 0.0), axis=-1, keepdims=True)

    nll_ref[...] = (m + lse) - target


def my_loss(x, y, *, block_bytes=4 * 1024 * 1024):
    """nn.CrossEntropyLoss()(x, y): mean NLL of log_softmax(x) at class y.

    x: (N, C) float logits (kept in its input dtype in HBM; cast to f32 in-kernel,
       so bf16 logits only move half the DMA bytes)
    y: (N,)   integer class indices
    """
    N, C = x.shape
    y2d = y.astype(jnp.int32).reshape(N, 1)

    # Batch tile: largest multiple of 8 whose (TM, C) logits block stays ~4 MiB,
    # so inputs x 2 pipeline buffers remain well under the scoped VMEM limit even
    # on v7x (64 MiB physical / 32 MiB scoped), while staying big enough for the
    # auto-pipeliner to hide the HBM->VMEM DMA (this kernel is memory-bound).
    bytes_per_row = C * jnp.dtype(x.dtype).itemsize
    tm = min(1024, max(8, block_bytes // max(1, bytes_per_row)))
    tm = max(8, (tm // 8) * 8)
    if N <= tm:
        tm = N                         # single block; full-extent dims are always legal
    grid = (pl.cdiv(N, tm),)

    # TODO(synk): for very large C (LLM-vocab scale) the class axis should also be
    # tiled with an online running max/sum; unnecessary for the module's C=39.
    nll = pl.pallas_call(
        _ce_rows_kernel,
        out_shape=jax.ShapeDtypeStruct((N, 1), jnp.float32),
        grid=grid,
        in_specs=[
            pl.BlockSpec((tm, C), lambda i: (i, 0)),
            pl.BlockSpec((tm, 1), lambda i: (i, 0)),
        ],
        out_specs=pl.BlockSpec((tm, 1), lambda i: (i, 0)),
        compiler_params=pltpu.CompilerParams(
            # Batch tiles are independent (no resident accumulator), so the grid
            # axis can shard across both TensorCores on v7x.
            dimension_semantics=("parallel",),
        ),
    )(x, y2d)

    # reduction='mean' done in the wrapper over the tiny (N, 1) per-row NLL;
    # keeps the grid axis fully parallel instead of forcing an 'arbitrary'
    # serial reduction onto one core.
    return jnp.sum(nll) / jnp.float32(N)


if __name__ == "__main__":
    key = jax.random.PRNGKey(0)
    kx, ky = jax.random.split(key)

    N, C = 8, 39                       # batch=8, num_classes=39 (module default)
    x = jax.random.normal(kx, (N, C), dtype=jnp.float32)
    y = jax.random.randint(ky, (N,), 0, C, dtype=jnp.int32)

    loss = my_loss(x, y)
    jax.block_until_ready(loss)

    # reference check against plain JAX log-softmax cross-entropy
    logp_ref = jax.nn.log_softmax(x, axis=-1)
    ref = -jnp.mean(logp_ref[jnp.arange(N), y])
    assert jnp.allclose(loss, ref, atol=1e-5, rtol=1e-5), (loss, ref)

    print("KERNEL_OK")
</pallas_src>

<mosaic_0001>
module attributes {stable_mosaic.version = 11 : i64} {
  func.func @_ce_rows_kernel(%arg0: i32, %arg1: memref<8x39xf32, #tpu.memory_space<vmem>>, %arg2: memref<8x1xi32, #tpu.memory_space<vmem>>, %arg3: memref<8x1xf32, #tpu.memory_space<vmem>>) attributes {dimension_semantics = [#tpu.dimension_semantics<parallel>], iteration_bounds = array<i64: 1>, scalar_prefetch = 0 : i64, scratch_operands = 0 : i64, tpu.core_type = #tpu.core_type<tc>, window_params = [{transform_indices = @transform_0, window_bounds = array<i64: 8, 39>}, {transform_indices = @transform_1, window_bounds = array<i64: 8, 1>}, {transform_indices = @transform_2, window_bounds = array<i64: 8, 1>}]} {
    %c0 = arith.constant 0 : index
    %c0_0 = arith.constant 0 : index
    %0 = vector.load %arg1[%c0, %c0_0] : memref<8x39xf32, #tpu.memory_space<vmem>>, vector<8x39xf32>
    %c0_1 = arith.constant 0 : index
    %c0_2 = arith.constant 0 : index
    %1 = vector.load %arg2[%c0_1, %c0_2] : memref<8x1xi32, #tpu.memory_space<vmem>>, vector<8x1xi32>
    %cst = arith.constant dense<0xFF800000> : vector<8xf32>
    %2 = vector.multi_reduction <maximumf>, %0, %cst [1] : vector<8x39xf32> to vector<8xf32>
    %3 = vector.shape_cast %2 : vector<8xf32> to vector<8x1xf32>
    %4 = vector.broadcast %3 : vector<8x1xf32> to vector<8x39xf32>
    %5 = arith.subf %0, %4 : vector<8x39xf32>
    %6 = math.exp %5 : vector<8x39xf32>
    %cst_3 = arith.constant dense<0.000000e+00> : vector<8xf32>
    %7 = vector.multi_reduction <add>, %6, %cst_3 [1] : vector<8x39xf32> to vector<8xf32>
    %8 = vector.shape_cast %7 : vector<8xf32> to vector<8x1xf32>
    %9 = math.log %8 : vector<8x1xf32>
    %10 = tpu.iota {dimensions = array<i32: 1>} : vector<8x39xi32>
    %11 = vector.broadcast %1 : vector<8x1xi32> to vector<8x39xi32>
    %12 = arith.cmpi eq, %10, %11 : vector<8x39xi32>
    %cst_4 = arith.constant 0.000000e+00 : f32
    %13 = vector.broadcast %cst_4 : f32 to vector<8x39xf32>
    %14 = arith.select %12, %0, %13 : vector<8x39xi1>, vector<8x39xf32>
    %cst_5 = arith.constant dense<0.000000e+00> : vector<8xf32>
    %15 = vector.multi_reduction <add>, %14, %cst_5 [1] : vector<8x39xf32> to vector<8xf32>
    %16 = vector.shape_cast %15 : vector<8xf32> to vector<8x1xf32>
    %17 = arith.addf %3, %9 : vector<8x1xf32>
    %18 = arith.subf %17, %16 : vector<8x1xf32>
    %c0_6 = arith.constant 0 : index
    %c0_7 = arith.constant 0 : index
    %19 = vector.load %arg3[%c0_6, %c0_7] : memref<8x1xf32, #tpu.memory_space<vmem>>, vector<8x1xf32>
    tpu.vector_store %arg3[%c0_6, %c0_7], %18 {strides = array<i32>} : memref<8x1xf32, #tpu.memory_space<vmem>>, vector<8x1xf32>,
    return
  }
  func.func @transform_0(%arg0: i32) -> (i32, i32) {
    %c0_i32 = arith.constant 0 : i32
    %c0_i32_0 = arith.constant 0 : i32
    return %arg0, %c0_i32 : i32, i32
  }
  func.func @transform_1(%arg0: i32) -> (i32, i32) {
    %c0_i32 = arith.constant 0 : i32
    %c0_i32_0 = arith.constant 0 : i32
    return %arg0, %c0_i32 : i32, i32
  }
  func.func @transform_2(%arg0: i32) -> (i32, i32) {
    %c0_i32 = arith.constant 0 : i32
    %c0_i32_0 = arith.constant 0 : i32
    return %arg0, %c0_i32 : i32, i32
  }
}

</mosaic_0001>

<bundles_post_ra>
// kernel: tpu_custom_call.1
= control target key start
LH: loop header
LB: loop body
LE: loop exit
PB: predicated region body
PF: predicated region fallthrough
CT: control target
= control target key end

     0   :  { %vm13_vm0 = vcmask 318464   ;;  %v49_v1 = vmov 0   ;;  %v25_v9 = vlaneseq  ;;  %vm37_vm2 = vcmask 7168   ;;  %s77_s0 = inlined_call_operand.vmem [shape: f32[8,39], index: 0, kind: input, shape index: {}]   ;;  %s78_s1 = inlined_call_operand.vmem [shape: s32[8,1], index: 1, kind: input, shape index: {}]   ;;  %s79_s2 = inlined_call_operand.vmem [shape: f32[8,1], index: 2, kind: output, shape index: {}]  }
   0x1   :  { %v11_v0 = vld [vmem:[%s77_s0] sm:$0xff]  ;;  %44 = vset.pattern.permute.xlu0 %v49_v1 }
   0x2   :  { %v14_v2 = vsel %vm13_vm0, %v11_v0, -inf  ;;  %v12_v3 = vld [vmem:[%s78_s1] sm:$0xff]  ;;  %v26_v10 = vand.u32 127, %v25_v9 }
   0x3   :  { %15 = vmax.xlane.f32.xlu0 %v14_v2 }
  0x17   :  { %28 = vperm.xlu0 %44, %v12_v3  }
  0x76   :  { %v16_v4 = vpop.xlane.xlu0 %15 }
  0x77   :  { %v17_v5 = vsub.f32 %v11_v0, %v16_v4 }
  0x79   :  { %v18_v6 = vmul.f32 1.442695, %v17_v5 }
  0x7b   :  { %45 = vpow2.f32 %v18_v6 }
  0x81   :  { %v46_v7 = vpop.eup %45 }
  0x82   :  { %v20_v8 = vsel %vm13_vm0, %v46_v7, 0.0 }
  0x83   :  { %21 = vadd.xlane.f32.xlu1 %v20_v8 }
  0x89   :  { %v29_v11 = vpop.permute.xlu0 %28 }
  0x8a   :  { %vm30_vm1 = vcmp.eq.s32.totalorder %v26_v10, %v29_v11 }
  0x8b   :  { %v31_v12 = vsel %vm30_vm1, %v11_v0, 0.0 }
  0x8c   :  { %v32_v13 = vsel %vm13_vm0, %v31_v12, 0.0 }
  0x8d   :  { %33 = vadd.xlane.f32.xlu1 %v32_v13 }
  0xf6   :  { %v22_v14 = vpop.xlane.xlu1 %21 }
  0xf7   :  { %47 = vlog2.f32 %v22_v14 }
  0xfd   :  { %v48_v15 = vpop.eup %47 }
  0xfe   :  { %v24_v16 = vmul.f32 0.6931472, %v48_v15 }
 0x100   :  { %v35_v17 = vadd.f32 %v24_v16, %v16_v4  ;;  %v34_v18 = vpop.xlane.xlu1 %33 }
 0x102   :  { %v36_v19 = vsub.f32 %v35_v17, %v34_v18 }
 0x104   :  { %38 = vst.msk [vmem:[%s79_s2] sm:$0xff] %vm37_vm2, %v36_v19 }

</bundles_post_ra>
